<compile_context>
chip_gen: v6e
topology: v6e:2x2x1
jax: 0.10.0
libtpu: 0.0.40
codegen_flags: <defaults>
</compile_context>

<pallas_src>
import functools

import jax
import jax.numpy as jnp
from jax.experimental import pallas as pl
from jax.experimental.pallas import tpu as pltpu


def _round_up(x, m):
    return ((x + m - 1) // m) * m


def _policy_kernel(x_ref, w1_ref, b1_ref, w2_ref, b2_ref, w3_ref, b3_ref, o_ref):
    mm_dtype = w1_ref.dtype
    # Cast the streamed activations to the matmul dtype inside the kernel
    # (avoids an extra wrapper-side HBM pass over x); accumulate in f32.
    x = x_ref[...].astype(mm_dtype)

    # fc1 + relu
    h1 = jnp.dot(x, w1_ref[...], preferred_element_type=jnp.float32) + b1_ref[...]
    h1 = jnp.maximum(h1, 0.0)

    # fc2 + relu
    h2 = jnp.dot(h1.astype(mm_dtype), w2_ref[...],
                 preferred_element_type=jnp.float32) + b2_ref[...]
    h2 = jnp.maximum(h2, 0.0)

    # fc3 (real action_dim width, no padded columns)
    logits = jnp.dot(h2.astype(mm_dtype), w3_ref[...],
                     preferred_element_type=jnp.float32) + b3_ref[...]

    # Numerically-stable softmax over the action axis; exact divide so row
    # sums are 1 to float32 rounding.
    m = jnp.max(logits, axis=-1, keepdims=True)
    e = jnp.exp(logits - m)
    denom = jnp.sum(e, axis=-1, keepdims=True)
    o_ref[...] = (e / denom).astype(o_ref.dtype)


@functools.partial(jax.jit, static_argnames=("block_b", "matmul_dtype"))
def policy_forward(x, params, *, block_b=4096, matmul_dtype=jnp.bfloat16):
    """x: (B, state_dim) float32. Returns (B, action_dim) softmax probs (f32)."""
    w1, b1, w2, b2, w3, b3 = params
    B, state_dim = x.shape
    h1_dim = w1.shape[1]
    h2_dim = w2.shape[1]
    action_dim = w3.shape[1]

    # --- batch tiling --------------------------------------------------------
    b8 = _round_up(B, 8)
    tb = min(block_b, b8)
    if b8 >= 16:
        # Keep >= 2 grid steps so the "parallel" axis can shard across v7x's
        # two TensorCores.
        tb = min(tb, _round_up((b8 + 1) // 2, 8))
    tb = _round_up(tb, 8)
    b_pad = _round_up(B, tb)
    grid = (b_pad // tb,)

    x_in = x if b_pad == B else jnp.pad(x, ((0, b_pad - B), (0, 0)))

    # Weights cast once to the matmul dtype (bf16 by default); biases stay f32.
    if matmul_dtype != w1.dtype:
        w1c, w2c, w3c = (w.astype(matmul_dtype) for w in (w1, w2, w3))
    else:
        w1c, w2c, w3c = w1, w2, w3

    def resident(shape):
        # Full-array block, same block index every grid step -> VMEM resident.
        return pl.BlockSpec(shape, lambda i: (0, 0))

    in_specs = [
        pl.BlockSpec((tb, state_dim), lambda i: (i, 0)),  # x tile (streamed)
        resident((state_dim, h1_dim)),                    # w1
        resident((1, h1_dim)),                            # b1 (f32)
        resident((h1_dim, h2_dim)),                       # w2
        resident((1, h2_dim)),                            # b2 (f32)
        resident((h2_dim, action_dim)),                   # w3
        resident((1, action_dim)),                        # b3 (f32)
    ]
    out_spec = pl.BlockSpec((tb, action_dim), lambda i: (i, 0))

    flops = 2 * b_pad * (state_dim * h1_dim + h1_dim * h2_dim + h2_dim * action_dim)
    bytes_accessed = (
        x_in.size * x_in.dtype.itemsize
        + sum(w.size * w.dtype.itemsize for w in (w1c, w2c, w3c))
        + (b1.size + b2.size + b3.size) * 4
        + b_pad * action_dim * 4
    )
    cost = pl.CostEstimate(flops=flops,
                           transcendentals=b_pad * action_dim,
                           bytes_accessed=bytes_accessed)

    out = pl.pallas_call(
        _policy_kernel,
        out_shape=jax.ShapeDtypeStruct((b_pad, action_dim), jnp.float32),
        grid=grid,
        in_specs=in_specs,
        out_specs=out_spec,
        compiler_params=pltpu.CompilerParams(
            dimension_semantics=("parallel",),
            vmem_limit_bytes=64 * 1024 * 1024,
        ),
        cost_estimate=cost,
    )(x_in, w1c, b1, w2c, b2, w3c, b3)

    if b_pad != B:
        out = out[:B]
    return out


def init_policy_params(key, state_dim, action_dim):
    """Deterministic init mimicking PyTorch's nn.Linear (uniform +/- 1/sqrt(fan_in)).

    Weights are stored as (in_features, out_features)."""
    dims = [(state_dim, 256), (256, 128), (128, action_dim)]
    params = []
    for (fan_in, fan_out) in dims:
        key, kw, kb = jax.random.split(key, 3)
        bound = 1.0 / jnp.sqrt(fan_in)
        w = jax.random.uniform(kw, (fan_in, fan_out), jnp.float32, -bound, bound)
        b = jax.random.uniform(kb, (1, fan_out), jnp.float32, -bound, bound)
        params.extend([w, b])
    return tuple(params)


def _reference_forward(x, params, matmul_dtype=jnp.float32):
    """Pure-JAX reference with precision-matched matmul operands."""
    w1, b1, w2, b2, w3, b3 = params
    c = lambda a: a.astype(matmul_dtype)
    h1 = jnp.maximum(
        jnp.dot(c(x), c(w1), preferred_element_type=jnp.float32) + b1, 0.0)
    h2 = jnp.maximum(
        jnp.dot(c(h1), c(w2), preferred_element_type=jnp.float32) + b2, 0.0)
    logits = jnp.dot(c(h2), c(w3), preferred_element_type=jnp.float32) + b3
    return jax.nn.softmax(logits, axis=-1)


if __name__ == "__main__":
    state_dim = 32
    action_dim = 8
    batch = 2

    key = jax.random.PRNGKey(0)
    key, kx = jax.random.split(key)
    x = jax.random.normal(kx, (batch, state_dim), dtype=jnp.float32)
    params = init_policy_params(key, state_dim, action_dim)

    # Default path: bf16 matmul operands, f32 accumulation / biases / softmax.
    probs = jax.block_until_ready(policy_forward(x, params))
    assert probs.shape == (batch, action_dim)
    assert bool(jnp.allclose(jnp.sum(probs, axis=-1), 1.0, atol=1e-5))
    ref_bf16 = _reference_forward(x, params, matmul_dtype=jnp.bfloat16)
    assert bool(jnp.allclose(probs, ref_bf16, atol=2e-3, rtol=2e-3))

    # Bit-accurate f32 path.
    probs_f32 = jax.block_until_ready(
        policy_forward(x, params, matmul_dtype=jnp.float32))
    ref_f32 = _reference_forward(x, params, matmul_dtype=jnp.float32)
    assert bool(jnp.allclose(probs_f32, ref_f32, atol=2e-3, rtol=2e-3))

    print("KERNEL_OK")
</pallas_src>

<mosaic_0001>
module attributes {stable_mosaic.version = 11 : i64} {
  func.func @_policy_kernel(%arg0: i32, %arg1: memref<8x32xf32, #tpu.memory_space<vmem>>, %arg2: memref<32x256xbf16, #tpu.memory_space<vmem>>, %arg3: memref<1x256xf32, #tpu.memory_space<vmem>>, %arg4: memref<256x128xbf16, #tpu.memory_space<vmem>>, %arg5: memref<1x128xf32, #tpu.memory_space<vmem>>, %arg6: memref<128x8xbf16, #tpu.memory_space<vmem>>, %arg7: memref<1x8xf32, #tpu.memory_space<vmem>>, %arg8: memref<8x8xf32, #tpu.memory_space<vmem>>) attributes {dimension_semantics = [#tpu.dimension_semantics<parallel>], iteration_bounds = array<i64: 1>, scalar_prefetch = 0 : i64, scratch_operands = 0 : i64, tpu.core_type = #tpu.core_type<tc>, window_params = [{transform_indices = @transform_0, window_bounds = array<i64: 8, 32>}, {pipeline_mode = #tpu.pipeline_mode<synchronous>, transform_indices = @transform_1, window_bounds = array<i64: 32, 256>}, {pipeline_mode = #tpu.pipeline_mode<synchronous>, transform_indices = @transform_2, window_bounds = array<i64: 1, 256>}, {pipeline_mode = #tpu.pipeline_mode<synchronous>, transform_indices = @transform_3, window_bounds = array<i64: 256, 128>}, {pipeline_mode = #tpu.pipeline_mode<synchronous>, transform_indices = @transform_4, window_bounds = array<i64: 1, 128>}, {pipeline_mode = #tpu.pipeline_mode<synchronous>, transform_indices = @transform_5, window_bounds = array<i64: 128, 8>}, {pipeline_mode = #tpu.pipeline_mode<synchronous>, transform_indices = @transform_6, window_bounds = array<i64: 1, 8>}, {transform_indices = @transform_7, window_bounds = array<i64: 8, 8>}]} {
    %c0 = arith.constant 0 : index
    %c0_0 = arith.constant 0 : index
    %0 = vector.load %arg1[%c0, %c0_0] : memref<8x32xf32, #tpu.memory_space<vmem>>, vector<8x32xf32>
    %1 = arith.truncf %0 : vector<8x32xf32> to vector<8x32xbf16>
    %c0_1 = arith.constant 0 : index
    %c0_2 = arith.constant 0 : index
    %2 = vector.load %arg2[%c0_1, %c0_2] : memref<32x256xbf16, #tpu.memory_space<vmem>>, vector<32x256xbf16>
    %cst = arith.constant dense<0.000000e+00> : vector<8x256xf32>
    %3 = tpu.matmul %1, %2, %cst {dimension_numbers = #tpu.dot_dimension_numbers<[1], [0], [0], [1], [0, 0, 1, 1], [], []>} : vector<8x32xbf16>, vector<32x256xbf16>, vector<8x256xf32> -> vector<8x256xf32>
    %c0_3 = arith.constant 0 : index
    %c0_4 = arith.constant 0 : index
    %4 = vector.load %arg3[%c0_3, %c0_4] : memref<1x256xf32, #tpu.memory_space<vmem>>, vector<1x256xf32>
    %5 = vector.broadcast %4 : vector<1x256xf32> to vector<8x256xf32>
    %6 = arith.addf %3, %5 : vector<8x256xf32>
    %cst_5 = arith.constant 0.000000e+00 : f32
    %7 = vector.broadcast %cst_5 : f32 to vector<8x256xf32>
    %8 = arith.maximumf %6, %7 : vector<8x256xf32>
    %9 = arith.truncf %8 : vector<8x256xf32> to vector<8x256xbf16>
    %c0_6 = arith.constant 0 : index
    %c0_7 = arith.constant 0 : index
    %10 = vector.load %arg4[%c0_6, %c0_7] : memref<256x128xbf16, #tpu.memory_space<vmem>>, vector<256x128xbf16>
    %cst_8 = arith.constant dense<0.000000e+00> : vector<8x128xf32>
    %11 = tpu.matmul %9, %10, %cst_8 {dimension_numbers = #tpu.dot_dimension_numbers<[1], [0], [0], [1], [0, 0, 1, 1], [], []>} : vector<8x256xbf16>, vector<256x128xbf16>, vector<8x128xf32> -> vector<8x128xf32>
    %c0_9 = arith.constant 0 : index
    %c0_10 = arith.constant 0 : index
    %12 = vector.load %arg5[%c0_9, %c0_10] : memref<1x128xf32, #tpu.memory_space<vmem>>, vector<1x128xf32>
    %13 = vector.broadcast %12 : vector<1x128xf32> to vector<8x128xf32>
    %14 = arith.addf %11, %13 : vector<8x128xf32>
    %cst_11 = arith.constant 0.000000e+00 : f32
    %15 = vector.broadcast %cst_11 : f32 to vector<8x128xf32>
    %16 = arith.maximumf %14, %15 : vector<8x128xf32>
    %17 = arith.truncf %16 : vector<8x128xf32> to vector<8x128xbf16>
    %c0_12 = arith.constant 0 : index
    %c0_13 = arith.constant 0 : index
    %18 = vector.load %arg6[%c0_12, %c0_13] : memref<128x8xbf16, #tpu.memory_space<vmem>>, vector<128x8xbf16>
    %cst_14 = arith.constant dense<0.000000e+00> : vector<8x8xf32>
    %19 = tpu.matmul %17, %18, %cst_14 {dimension_numbers = #tpu.dot_dimension_numbers<[1], [0], [0], [1], [0, 0, 1, 1], [], []>} : vector<8x128xbf16>, vector<128x8xbf16>, vector<8x8xf32> -> vector<8x8xf32>
    %c0_15 = arith.constant 0 : index
    %c0_16 = arith.constant 0 : index
    %20 = vector.load %arg7[%c0_15, %c0_16] : memref<1x8xf32, #tpu.memory_space<vmem>>, vector<1x8xf32>
    %21 = vector.broadcast %20 : vector<1x8xf32> to vector<8x8xf32>
    %22 = arith.addf %19, %21 : vector<8x8xf32>
    %cst_17 = arith.constant dense<0xFF800000> : vector<8xf32>
    %23 = vector.multi_reduction <maximumf>, %22, %cst_17 [1] : vector<8x8xf32> to vector<8xf32>
    %24 = vector.shape_cast %23 : vector<8xf32> to vector<8x1xf32>
    %25 = vector.broadcast %24 : vector<8x1xf32> to vector<8x8xf32>
    %26 = arith.subf %22, %25 : vector<8x8xf32>
    %27 = math.exp %26 : vector<8x8xf32>
    %cst_18 = arith.constant dense<0.000000e+00> : vector<8xf32>
    %28 = vector.multi_reduction <add>, %27, %cst_18 [1] : vector<8x8xf32> to vector<8xf32>
    %29 = vector.shape_cast %28 : vector<8xf32> to vector<8x1xf32>
    %30 = vector.broadcast %29 : vector<8x1xf32> to vector<8x8xf32>
    %31 = arith.divf %27, %30 : vector<8x8xf32>
    %c0_19 = arith.constant 0 : index
    %c0_20 = arith.constant 0 : index
    %32 = vector.load %arg8[%c0_19, %c0_20] : memref<8x8xf32, #tpu.memory_space<vmem>>, vector<8x8xf32>
    tpu.vector_store %arg8[%c0_19, %c0_20], %31 {strides = array<i32>} : memref<8x8xf32, #tpu.memory_space<vmem>>, vector<8x8xf32>,
    return
  }
  func.func @transform_0(%arg0: i32) -> (i32, i32) {
    %c0_i32 = arith.constant 0 : i32
    %c0_i32_0 = arith.constant 0 : i32
    return %arg0, %c0_i32 : i32, i32
  }
  func.func @transform_1(%arg0: i32) -> (i32, i32) {
    %c0_i32 = arith.constant 0 : i32
    %c0_i32_0 = arith.constant 0 : i32
    %c0_i32_1 = arith.constant 0 : i32
    return %c0_i32, %c0_i32_0 : i32, i32
  }
  func.func @transform_2(%arg0: i32) -> (i32, i32) {
    %c0_i32 = arith.constant 0 : i32
    %c0_i32_0 = arith.constant 0 : i32
    %c0_i32_1 = arith.constant 0 : i32
    return %c0_i32, %c0_i32_0 : i32, i32
  }
  func.func @transform_3(%arg0: i32) -> (i32, i32) {
    %c0_i32 = arith.constant 0 : i32
    %c0_i32_0 = arith.constant 0 : i32
    %c0_i32_1 = arith.constant 0 : i32
    return %c0_i32, %c0_i32_0 : i32, i32
  }
  func.func @transform_4(%arg0: i32) -> (i32, i32) {
    %c0_i32 = arith.constant 0 : i32
    %c0_i32_0 = arith.constant 0 : i32
    %c0_i32_1 = arith.constant 0 : i32
    return %c0_i32, %c0_i32_0 : i32, i32
  }
  func.func @transform_5(%arg0: i32) -> (i32, i32) {
    %c0_i32 = arith.constant 0 : i32
    %c0_i32_0 = arith.constant 0 : i32
    %c0_i32_1 = arith.constant 0 : i32
    return %c0_i32, %c0_i32_0 : i32, i32
  }
  func.func @transform_6(%arg0: i32) -> (i32, i32) {
    %c0_i32 = arith.constant 0 : i32
    %c0_i32_0 = arith.constant 0 : i32
    %c0_i32_1 = arith.constant 0 : i32
    return %c0_i32, %c0_i32_0 : i32, i32
  }
  func.func @transform_7(%arg0: i32) -> (i32, i32) {
    %c0_i32 = arith.constant 0 : i32
    %c0_i32_0 = arith.constant 0 : i32
    return %arg0, %c0_i32 : i32, i32
  }
}

</mosaic_0001>

<bundles_post_ra>
// kernel: policy_forward.1
= control target key start
LH: loop header
LB: loop body
LE: loop exit
PB: predicated region body
PF: predicated region fallthrough
CT: control target
= control target key end

     0   :  { %v538_v1 = vmov 0   ;;  %vm65_vm0 = vcmask 261120   ;;  %v539_v23 = vmov 0.0   ;;  %v35_v29 = vlaneseq  ;;  %s683_s1 = inlined_call_operand.vmem [shape: bf16[32,256], index: 1, kind: input, shape index: {}]   ;;  %s684_s0 = inlined_call_operand.vmem [shape: f32[8,32], index: 0, kind: input, shape index: {}]   ;;  %s685_s3 = inlined_call_operand.vmem [shape: bf16[256,128], index: 3, kind: input, shape index: {}]   ;;  %s686_s5 = inlined_call_operand.vmem [shape: bf16[128,8], index: 5, kind: input, shape index: {}]   ;;  %s687_s2 = inlined_call_operand.vmem [shape: f32[1,256], index: 2, kind: input, shape index: {}]   ;;  %s688_s4 = inlined_call_operand.vmem [shape: f32[1,128], index: 4, kind: input, shape index: {}]   ;;  %s689_s6 = inlined_call_operand.vmem [shape: f32[1,8], index: 6, kind: input, shape index: {}]   ;;  %s690_s7 = inlined_call_operand.vmem [shape: f32[8,8], index: 7, kind: output, shape index: {}]  }
   0x1   :  { %v504_v0 = vld [vmem:[%s683_s1 + $0x14] ss:$8 sps:$4 sm:$0xff]   ;;  %101 = vmatprep.mubr.bf16.mxu0 %v538_v1  ;;  %v506_v2 = vld [vmem:[%s683_s1 + $0x10] ss:$8 sps:$4 sm:$0xff]   ;;  %v507_v3 = vld [vmem:[%s683_s1 + $0x4] ss:$8 sps:$4 sm:$0xff]  }
   0x2   :  { %81 = vmatprep.subr.bf16.mxu0 %v504_v0  ;;  %v509_v4 = vld [vmem:[%s683_s1] ss:$8 sps:$4 sm:$0xff]   ;;  %v510_v6 = vld [vmem:[%s685_s3 + $0x78] sm:$0xff]   ;;  %v512_v8 = vld [vmem:[%s685_s3 + $0x70] sm:$0xff]   ;;  %v36_v30 = vshrl.u32 %v35_v29, 7  ;;  %vm540_vm1 = vmmov 0  }
   0x3   :  { %v27_v5 = vld [vmem:[%s684_s0] sm:$0xff]  ;;  %82 = vmatpush1.bf16.msra.mxu0 %v506_v2  ;;  %v511_v7 = vld [vmem:[%s685_s3 + $0x38] sm:$0xff]   ;;  %450 = vmatprep.subr.bf16.mxu1 %v510_v6  ;;  %v513_v10 = vld [vmem:[%s685_s3 + $0x30] sm:$0xff]   ;;  %vm402_vm2 = vcmask 64512  }
   0x4   :  { %83 = vmatprep.subr.bf16.mxu0 %v507_v3  ;;  %v28_v9 = vpack.c.bf16 %v27_v5, %v27_v5  ;;  %451 = vmatpush3.bf16.msra.mxu1 %v511_v7  ;;  %v514_v11 = vld [vmem:[%s685_s3 + $0x68] sm:$0xff]   ;;  %v516_v13 = vld [vmem:[%s685_s3 + $0x60] sm:$0xff]   ;;  %v518_v15 = vld [vmem:[%s685_s3 + $0x58] sm:$0xff]   ;;  %v37_v31 = vsub.s32 0, %v36_v30  ;;  %v41_v33 = vsub.s32 1, %v36_v30 }
   0x5   :  { %452 = vmatprep.subr.bf16.mxu1 %v512_v8  ;;  %v515_v12 = vld [vmem:[%s685_s3 + $0x28] sm:$0xff]   ;;  %v517_v14 = vld [vmem:[%s685_s3 + $0x20] sm:$0xff]   ;;  %v519_v16 = vld [vmem:[%s685_s3 + $0x18] sm:$0xff]  }
   0x6   :  { %v520_v17 = vld [vmem:[%s685_s3 + $0x50] sm:$0xff]   ;;  %v522_v19 = vld [vmem:[%s685_s3 + $0x48] sm:$0xff]   ;;  %v524_v21 = vld [vmem:[%s685_s3 + $0x40] sm:$0xff]  }
   0x7   :  { %84 = vmatpush1.bf16.msra.mxu0 %v509_v4  ;;  %v521_v18 = vld [vmem:[%s685_s3 + $0x10] sm:$0xff]   ;;  %v523_v20 = vld [vmem:[%s685_s3 + $0x8] sm:$0xff]   ;;  %v525_v22 = vld [vmem:[%s685_s3] sm:$0xff]  }
   0x8   :  { %453 = vmatpush3.bf16.msra.mxu1 %v513_v10  ;;  %481 = vmatprep.subr.bf16.mxu0 %v539_v23  ;;  %v526_v24 = vld [vmem:[%s686_s5 + $0x38] sm:$0xff]   ;;  %v527_v25 = vld [vmem:[%s686_s5 + $0x30] sm:$0xff]   ;;  %v528_v26 = vld [vmem:[%s686_s5 + $0x28] sm:$0xff]  }
   0x9   :  { %454 = vmatprep.subr.bf16.mxu1 %v514_v11  ;;  %v529_v27 = vld [vmem:[%s686_s5 + $0x20] sm:$0xff]   ;;  %v530_v28 = vld [vmem:[%s686_s5 + $0x18] sm:$0xff]   ;;  %v531_v46 = vld [vmem:[%s686_s5 + $0x10] sm:$0xff]  }
   0xa   :  { %423 = vmatmul.mubr.msk.bf16.vlgmr.msra.gmra.mxu0 %vm65_vm0, %v28_v9  ;;  %v33_v32 = vld [vmem:[%s687_s2] sm:$0x3]  ;;  %v532_v47 = vld [vmem:[%s686_s5 + $0x8] sm:$0xff]  }
   0xb   :  { %482 = vmatpush3.bf16.msra.mxu0 %v526_v24  ;;  %v38_v34 = vrot.slane %v33_v32, %v37_v31  ;;  %v42_v35 = vrot.slane %v33_v32, %v41_v33  ;;  %v533_v48 = vld [vmem:[%s686_s5] sm:$0xff]   ;;  %497 = vmatprep.mubr.msk.bf16.mxu0 %vm540_vm1, %v539_v23 }
   0xc   :  { %455 = vmatpush3.bf16.msra.mxu1 %v515_v12  ;;  %483 = vmatprep.subr.bf16.mxu0 %v539_v23  ;;  %v424_v50 = vld [vmem:[%s688_s4] ss:$0 sm:$0xff] }
   0xd   :  { %456 = vmatprep.subr.bf16.mxu1 %v516_v13  ;;  %v441_v58 = vld [vmem:[%s689_s6] ss:$0 sm:$0xff] }
   0xf   :  { %484 = vmatpush3.bf16.msra.mxu0 %v527_v25 }
  0x10   :  { %457 = vmatpush3.bf16.msra.mxu1 %v517_v14  ;;  %485 = vmatprep.subr.bf16.mxu0 %v539_v23 }
  0x11   :  { %458 = vmatprep.subr.bf16.mxu1 %v518_v15 }
  0x13   :  { %486 = vmatpush3.bf16.msra.mxu0 %v528_v26 }
  0x14   :  { %459 = vmatpush3.bf16.msra.mxu1 %v519_v16  ;;  %487 = vmatprep.subr.bf16.mxu0 %v539_v23 }
  0x15   :  { %460 = vmatprep.subr.bf16.mxu1 %v520_v17 }
  0x17   :  { %488 = vmatpush3.bf16.msra.mxu0 %v529_v27 }
  0x18   :  { %461 = vmatpush3.bf16.msra.mxu1 %v521_v18  ;;  %489 = vmatprep.subr.bf16.mxu0 %v539_v23 }
  0x19   :  { %462 = vmatprep.subr.bf16.mxu1 %v522_v19 }
  0x1b   :  { %490 = vmatpush3.bf16.msra.mxu0 %v530_v28 }
  0x1c   :  { %463 = vmatpush3.bf16.msra.mxu1 %v523_v20  ;;  %491 = vmatprep.subr.bf16.mxu0 %v539_v23 }
  0x1d   :  { %464 = vmatprep.subr.bf16.mxu1 %v524_v21 }
  0x1f   :  { %492 = vmatpush3.bf16.msra.mxu0 %v531_v46 }
  0x20   :  { %465 = vmatpush3.bf16.msra.mxu1 %v525_v22  ;;  %493 = vmatprep.subr.bf16.mxu0 %v539_v23 }
  0x23   :  { %494 = vmatpush3.bf16.msra.mxu0 %v532_v47 }
  0x24   :  { %495 = vmatprep.subr.bf16.mxu0 %v539_v23 }
  0x27   :  { %496 = vmatpush3.bf16.msra.mxu0 %v533_v48 }
  0xca   :  { %v103_v36 = vpop.f32.mrf.mxu0 }
  0xcb   :  { %v104_v37 = vadd.f32 %v103_v36, %v38_v34 }
  0xcc   :  { %v105_v38 = vpop.f32.mrf.mxu0 }
  0xcd   :  { %v106_v39 = vadd.f32 %v105_v38, %v42_v35  ;;  %v110_v40 = vmax.f32 %v104_v37, 0.0 }
  0xce   :  { %v107_v41 = vpop.f32.mrf.mxu0 }
  0xcf   :  { %v111_v42 = vmax.f32 %v106_v39, 0.0  ;;  %v112_v45 = vpack.c.bf16 %v110_v40, %v110_v40 }
  0xd0   :  { %v108_v43 = vpop.f32.mrf.mxu0 }
  0xd1   :  { %v113_v44 = vpack.c.bf16 %v111_v42, %v111_v42 }
  0xd3   :  { %281 = vmatprep.mubr.bf16.mxu1 %v113_v44 }
  0xd4   :  { %282 = vmatmul.mubr.bf16.vlgmr.msra.gmra.mxu1 %v112_v45 }
 0x194   :  { %v466_v49 = vpop.f32.mrf.mxu1 }
 0x196   :  { %v467_v51 = vpop.f32.mrf.mxu1 }
 0x197   :  { %v468_v52 = vadd.f32 %v467_v51, %v466_v49 }
 0x198   :  { %v469_v53 = vpop.f32.mrf.mxu1 }
 0x199   :  { %v284_v54 = vadd.f32 %v468_v52, %v424_v50 }
 0x19a   :  { %v470_v55 = vpop.f32.mrf.mxu1 }
 0x19b   :  { %v289_v56 = vmax.f32 %v284_v54, 0.0 }
 0x19d   :  { %v290_v57 = vpack.c.bf16 %v289_v56, %v289_v56 }
 0x19f   :  { %498 = vmatmul.mubr.bf16.vlgmr.msra.gmra.mxu0 %v290_v57 }
 0x25f   :  { %v396_v59 = vpop.f32.mrf.mxu0 }
 0x260   :  { %v397_v60 = vadd.f32 %v441_v58, %v396_v59 }
 0x261   :  { %v499_v61 = vpop.f32.mrf.mxu0 }
 0x262   :  { %v403_v62 = vsel %vm402_vm2, %v397_v60, -inf }
 0x263   :  { %404 = vmax.xlane.f32.xlu0 %v403_v62  ;;  %v399_v63 = vpop.f32.mrf.mxu0 }
 0x265   :  { %v500_v0 = vpop.f32.mrf.mxu0 }
 0x2ec   :  { %v405_v1 = vpop.xlane.xlu0 %404 }
 0x2ed   :  { %v406_v2 = vsub.f32 %v397_v60, %v405_v1 }
 0x2ef   :  { %v407_v3 = vmul.f32 1.442695, %v406_v2 }
 0x2f1   :  { %534 = vpow2.f32 %v407_v3 }
 0x2fe   :  { %v535_v4 = vpop.eup %534 }
 0x2ff   :  { %v409_v5 = vsel %vm402_vm2, %v535_v4, 0.0 }
 0x300   :  { %410 = vadd.xlane.f32.xlu0 %v409_v5 }
 0x389   :  { %v411_v6 = vpop.xlane.xlu0 %410 }
 0x38a   :  { %536 = vrcp.f32 %v411_v6 }
 0x397   :  { %v537_v7 = vpop.eup %536 }
 0x398   :  { %v413_v8 = vmul.f32 %v537_v7, %v535_v4 }
 0x39a   :  { %414 = vst.msk [vmem:[%s690_s7] sm:$0xff] %vm402_vm2, %v413_v8 }

</bundles_post_ra>
